<compile_context>
chip_gen: v7x
topology: tpu7x:2x2x1
jax: 0.10.0
libtpu: 0.0.40
codegen_flags: <defaults>
</compile_context>

<pallas_src>
import math
import functools

import jax
import jax.numpy as jnp
from jax import lax
from jax.experimental import pallas as pl
from jax.experimental.pallas import tpu as pltpu


def _mha_kernel(xq_ref, xkv_ref, wq_ref, wk_ref, wv_ref, bq_ref, bk_ref, bv_ref,
                o_ref, q_scr, m_scr, l_scr, acc_scr, *, h, hd_qk, hd_v):
    """Grid point (b, i, j): q-tile i of batch b against kv-tile j.

    Ref shapes per grid point:
      xq_ref  : (1, tq, input_dim)   rows used for Q
      xkv_ref : (1, tk, input_dim)   rows used for K/V
      wq/wk   : (input_dim, qk_dim)  (scale already folded into wq)
      wv      : (input_dim, v_dim)
      bq/bk   : (1, qk_dim), bv: (1, v_dim)
      o_ref   : (1, tq, v_dim)       final head-major concat layout
    Scratch:
      q_scr   : (tq, qk_dim) f32     scaled Q projection, cached across kv steps
      m_scr   : (h, tq, 1)   f32     running max per head
      l_scr   : (h, tq, 1)   f32     running denom per head
      acc_scr : (tq, v_dim)  f32     running weighted-V accumulator (all heads)
    """
    j = pl.program_id(2)
    last_j = pl.num_programs(2) - 1

    @pl.when(j == 0)
    def _init():
        x_q = xq_ref[0]                                          # (tq, input_dim)
        q = jnp.dot(x_q, wq_ref[...],
                    preferred_element_type=jnp.float32) + bq_ref[...]
        q_scr[...] = q                                           # already scaled
        m_scr[...] = jnp.full_like(m_scr, -jnp.inf)
        l_scr[...] = jnp.zeros_like(l_scr)
        acc_scr[...] = jnp.zeros_like(acc_scr)

    # Fused full-width K / V projections for this kv tile (lane-dense MXU ops).
    x_kv = xkv_ref[0]                                            # (tk, input_dim)
    k = jnp.dot(x_kv, wk_ref[...],
                preferred_element_type=jnp.float32) + bk_ref[...]   # (tk, qk_dim)
    v = jnp.dot(x_kv, wv_ref[...],
                preferred_element_type=jnp.float32) + bv_ref[...]   # (tk, v_dim)
    q = q_scr[...]                                               # (tq, qk_dim)

    # Online softmax per head (static unrolled loop over heads).
    for i in range(h):
        aq, bqk = i * hd_qk, (i + 1) * hd_qk
        av, bvv = i * hd_v, (i + 1) * hd_v
        q_h = q[:, aq:bqk]                                       # (tq, hd_qk)
        k_h = k[:, aq:bqk]                                       # (tk, hd_qk)
        v_h = v[:, av:bvv]                                       # (tk, hd_v)

        # scores = q_h @ k_h^T without an explicit transpose of K.
        s = lax.dot_general(q_h, k_h, (((1,), (1,)), ((), ())),
                            preferred_element_type=jnp.float32)  # (tq, tk)

        m_prev = m_scr[i]                                        # (tq, 1)
        l_prev = l_scr[i]
        m_new = jnp.maximum(m_prev, jnp.max(s, axis=-1, keepdims=True))
        alpha = jnp.exp(m_prev - m_new)
        p = jnp.exp(s - m_new)                                   # (tq, tk)
        l_scr[i] = alpha * l_prev + jnp.sum(p, axis=-1, keepdims=True)
        m_scr[i] = m_new

        ctx = jnp.dot(p, v_h, preferred_element_type=jnp.float32)   # (tq, hd_v)
        acc_scr[:, av:bvv] = alpha * acc_scr[:, av:bvv] + ctx

    @pl.when(j == last_j)
    def _finalize():
        for i in range(h):
            av, bvv = i * hd_v, (i + 1) * hd_v
            inv = pl.reciprocal(l_scr[i], approx=True)           # (tq, 1), EUP
            o_ref[0, :, av:bvv] = (acc_scr[:, av:bvv] * inv).astype(o_ref.dtype)


def multi_head_attention(x, params, *, qk_dim, v_dim, h, dk=None,
                         tq=None, tk=None):
    """Pallas implementation of multiHeadAttention.forward.

    x: (batch, seq, input_dim) float32
    params: torch-convention weights:
       wq, wk: (qk_dim, input_dim), wv: (v_dim, input_dim)
       bq, bk: (qk_dim,),           bv: (v_dim,)
    returns: (batch, seq, v_dim)  (head-major channel concat, same as PyTorch)
    """
    batch, seq, input_dim = x.shape
    assert qk_dim % h == 0 and v_dim % h == 0, "qk_dim/v_dim must divide h"
    hd_qk = qk_dim // h
    hd_v = v_dim // h
    scale = 1.0 / math.sqrt(dk if dk is not None else qk_dim // h)

    # One-time layout plumbing: (out, in) -> (in, out); fold scale into Q proj.
    wq = jnp.transpose(params["wq"]) * scale          # (input_dim, qk_dim)
    wk = jnp.transpose(params["wk"])                  # (input_dim, qk_dim)
    wv = jnp.transpose(params["wv"])                  # (input_dim, v_dim)
    bq = (params["bq"] * scale).reshape(1, qk_dim)
    bk = params["bk"].reshape(1, qk_dim)
    bv = params["bv"].reshape(1, v_dim)

    # Tile sizes: modest defaults that fit v7x's smaller VMEM; full-seq for
    # small inputs (block == full dim is always legal).
    if tq is None:
        tq = min(seq, 256)
    if tk is None:
        tk = min(seq, 512)
    assert seq % tq == 0 and seq % tk == 0, "seq must divide the tile sizes"

    grid = (batch, seq // tq, seq // tk)
    kernel = functools.partial(_mha_kernel, h=h, hd_qk=hd_qk, hd_v=hd_v)

    out = pl.pallas_call(
        kernel,
        out_shape=jax.ShapeDtypeStruct((batch, seq, v_dim), x.dtype),
        grid=grid,
        in_specs=[
            pl.BlockSpec((1, tq, input_dim), lambda b, i, j: (b, i, 0)),  # x (Q rows)
            pl.BlockSpec((1, tk, input_dim), lambda b, i, j: (b, j, 0)),  # x (KV rows)
            pl.BlockSpec((input_dim, qk_dim), lambda b, i, j: (0, 0)),    # wq (scaled)
            pl.BlockSpec((input_dim, qk_dim), lambda b, i, j: (0, 0)),    # wk
            pl.BlockSpec((input_dim, v_dim), lambda b, i, j: (0, 0)),     # wv
            pl.BlockSpec((1, qk_dim), lambda b, i, j: (0, 0)),            # bq (scaled)
            pl.BlockSpec((1, qk_dim), lambda b, i, j: (0, 0)),            # bk
            pl.BlockSpec((1, v_dim), lambda b, i, j: (0, 0)),             # bv
        ],
        out_specs=pl.BlockSpec((1, tq, v_dim), lambda b, i, j: (b, i, 0)),
        scratch_shapes=[
            pltpu.VMEM((tq, qk_dim), jnp.float32),   # cached scaled Q
            pltpu.VMEM((h, tq, 1), jnp.float32),     # running max per head
            pltpu.VMEM((h, tq, 1), jnp.float32),     # running denom per head
            pltpu.VMEM((tq, v_dim), jnp.float32),    # output accumulator
        ],
        compiler_params=pltpu.CompilerParams(
            dimension_semantics=("parallel", "parallel", "arbitrary")),
    )(x, x, wq, wk, wv, bq, bk, bv)
    return out


def _reference(x, params, *, qk_dim, v_dim, h, dk=None):
    """Pure-JAX reference mirroring the PyTorch forward exactly."""
    scale_dk = dk if dk is not None else qk_dim // h
    q = x @ params["wq"].T + params["bq"]
    k = x @ params["wk"].T + params["bk"]
    v = x @ params["wv"].T + params["bv"]
    # chunk dim=2, cat dim=0
    q = jnp.concatenate(jnp.split(q, h, axis=2), axis=0)
    k = jnp.concatenate(jnp.split(k, h, axis=2), axis=0)
    v = jnp.concatenate(jnp.split(v, h, axis=2), axis=0)
    att = jnp.einsum("bqd,bkd->bqk", q, k) / math.sqrt(scale_dk)
    att = jax.nn.softmax(att, axis=2)
    ctx = jnp.einsum("bqk,bkd->bqd", att, v)
    ctx = jnp.concatenate(jnp.split(ctx, h, axis=0), axis=2)
    return ctx


if __name__ == "__main__":
    # Small shapes consistent with the module's forward: x is (B, S, input_dim)
    batch, seq, input_dim = 2, 8, 32
    qk_dim, v_dim, h = 16, 16, 4

    key = jax.random.PRNGKey(0)
    k_x, k_wq, k_wk, k_wv, k_bq, k_bk, k_bv = jax.random.split(key, 7)

    bound = 1.0 / math.sqrt(input_dim)   # torch nn.Linear default init range
    params = {
        "wq": jax.random.uniform(k_wq, (qk_dim, input_dim), jnp.float32, -bound, bound),
        "wk": jax.random.uniform(k_wk, (qk_dim, input_dim), jnp.float32, -bound, bound),
        "wv": jax.random.uniform(k_wv, (v_dim, input_dim), jnp.float32, -bound, bound),
        "bq": jax.random.uniform(k_bq, (qk_dim,), jnp.float32, -bound, bound),
        "bk": jax.random.uniform(k_bk, (qk_dim,), jnp.float32, -bound, bound),
        "bv": jax.random.uniform(k_bv, (v_dim,), jnp.float32, -bound, bound),
    }
    x = jax.random.normal(k_x, (batch, seq, input_dim), jnp.float32)

    out = multi_head_attention(x, params, qk_dim=qk_dim, v_dim=v_dim, h=h)
    out = jax.block_until_ready(out)

    ref = _reference(x, params, qk_dim=qk_dim, v_dim=v_dim, h=h)
    assert out.shape == (batch, seq, v_dim)
    # Tolerance loosened slightly vs exact-f32 because the softmax denominator
    # uses the EUP approximate reciprocal (pl.reciprocal(..., approx=True)).
    assert jnp.allclose(out, ref, atol=1e-3, rtol=1e-3), "mismatch vs reference"

    print("KERNEL_OK")
</pallas_src>

<mosaic_0001>
module attributes {stable_mosaic.version = 11 : i64} {
  func.func @_mha_kernel(%arg0: i32, %arg1: i32, %arg2: i32, %arg3: memref<1x8x32xf32, #tpu.memory_space<vmem>>, %arg4: memref<1x8x32xf32, #tpu.memory_space<vmem>>, %arg5: memref<32x16xf32, #tpu.memory_space<vmem>>, %arg6: memref<32x16xf32, #tpu.memory_space<vmem>>, %arg7: memref<32x16xf32, #tpu.memory_space<vmem>>, %arg8: memref<1x16xf32, #tpu.memory_space<vmem>>, %arg9: memref<1x16xf32, #tpu.memory_space<vmem>>, %arg10: memref<1x16xf32, #tpu.memory_space<vmem>>, %arg11: memref<1x8x16xf32, #tpu.memory_space<vmem>>, %arg12: memref<8x16xf32, #tpu.memory_space<vmem>>, %arg13: memref<4x8x1xf32, #tpu.memory_space<vmem>>, %arg14: memref<4x8x1xf32, #tpu.memory_space<vmem>>, %arg15: memref<8x16xf32, #tpu.memory_space<vmem>>) attributes {dimension_semantics = [#tpu.dimension_semantics<parallel>, #tpu.dimension_semantics<parallel>, #tpu.dimension_semantics<arbitrary>], iteration_bounds = array<i64: 2, 1, 1>, scalar_prefetch = 0 : i64, scratch_operands = 4 : i64, tpu.core_type = #tpu.core_type<tc>, window_params = [{transform_indices = @transform_0, window_bounds = array<i64: 1, 8, 32>}, {transform_indices = @transform_1, window_bounds = array<i64: 1, 8, 32>}, {pipeline_mode = #tpu.pipeline_mode<synchronous>, transform_indices = @transform_2, window_bounds = array<i64: 32, 16>}, {pipeline_mode = #tpu.pipeline_mode<synchronous>, transform_indices = @transform_3, window_bounds = array<i64: 32, 16>}, {pipeline_mode = #tpu.pipeline_mode<synchronous>, transform_indices = @transform_4, window_bounds = array<i64: 32, 16>}, {pipeline_mode = #tpu.pipeline_mode<synchronous>, transform_indices = @transform_5, window_bounds = array<i64: 1, 16>}, {pipeline_mode = #tpu.pipeline_mode<synchronous>, transform_indices = @transform_6, window_bounds = array<i64: 1, 16>}, {pipeline_mode = #tpu.pipeline_mode<synchronous>, transform_indices = @transform_7, window_bounds = array<i64: 1, 16>}, {transform_indices = @transform_8, window_bounds = array<i64: 1, 8, 16>}]} {
    %c0_i32 = arith.constant 0 : i32
    %0 = arith.cmpi eq, %arg2, %c0_i32 : i32
    %1 = arith.extui %0 : i1 to i32
    %c0_i32_0 = arith.constant 0 : i32
    %2 = arith.cmpi ne, %1, %c0_i32_0 : i32
    scf.if %2 {
      %c0_90 = arith.constant 0 : index
      %c0_91 = arith.constant 0 : index
      %c0_92 = arith.constant 0 : index
      %147 = vector.load %arg3[%c0_90, %c0_91, %c0_92] : memref<1x8x32xf32, #tpu.memory_space<vmem>>, vector<1x8x32xf32>
      %148 = vector.shape_cast %147 : vector<1x8x32xf32> to vector<8x32xf32>
      %c0_93 = arith.constant 0 : index
      %c0_94 = arith.constant 0 : index
      %149 = vector.load %arg5[%c0_93, %c0_94] : memref<32x16xf32, #tpu.memory_space<vmem>>, vector<32x16xf32>
      %cst_95 = arith.constant dense<0.000000e+00> : vector<8x16xf32>
      %150 = tpu.matmul %148, %149, %cst_95 {dimension_numbers = #tpu.dot_dimension_numbers<[1], [0], [0], [1], [0, 0, 1, 1], [], []>} : vector<8x32xf32>, vector<32x16xf32>, vector<8x16xf32> -> vector<8x16xf32>
      %c0_96 = arith.constant 0 : index
      %c0_97 = arith.constant 0 : index
      %151 = vector.load %arg8[%c0_96, %c0_97] : memref<1x16xf32, #tpu.memory_space<vmem>>, vector<1x16xf32>
      %152 = vector.broadcast %151 : vector<1x16xf32> to vector<8x16xf32>
      %153 = arith.addf %150, %152 : vector<8x16xf32>
      %c0_98 = arith.constant 0 : index
      %c0_99 = arith.constant 0 : index
      %154 = vector.load %arg12[%c0_98, %c0_99] : memref<8x16xf32, #tpu.memory_space<vmem>>, vector<8x16xf32>
      tpu.vector_store %arg12[%c0_98, %c0_99], %153 {strides = array<i32>} : memref<8x16xf32, #tpu.memory_space<vmem>>, vector<8x16xf32>,
      %cst_100 = arith.constant 0xFF800000 : f32
      %155 = vector.broadcast %cst_100 : f32 to vector<4x8x1xf32>
      %c0_101 = arith.constant 0 : index
      %c0_102 = arith.constant 0 : index
      %c0_103 = arith.constant 0 : index
      %156 = vector.load %arg13[%c0_101, %c0_102, %c0_103] : memref<4x8x1xf32, #tpu.memory_space<vmem>>, vector<4x8x1xf32>
      tpu.vector_store %arg13[%c0_101, %c0_102, %c0_103], %155 {strides = array<i32>} : memref<4x8x1xf32, #tpu.memory_space<vmem>>, vector<4x8x1xf32>,
      %cst_104 = arith.constant 0.000000e+00 : f32
      %157 = vector.broadcast %cst_104 : f32 to vector<4x8x1xf32>
      %c0_105 = arith.constant 0 : index
      %c0_106 = arith.constant 0 : index
      %c0_107 = arith.constant 0 : index
      %158 = vector.load %arg14[%c0_105, %c0_106, %c0_107] : memref<4x8x1xf32, #tpu.memory_space<vmem>>, vector<4x8x1xf32>
      tpu.vector_store %arg14[%c0_105, %c0_106, %c0_107], %157 {strides = array<i32>} : memref<4x8x1xf32, #tpu.memory_space<vmem>>, vector<4x8x1xf32>,
      %cst_108 = arith.constant 0.000000e+00 : f32
      %159 = vector.broadcast %cst_108 : f32 to vector<8x16xf32>
      %c0_109 = arith.constant 0 : index
      %c0_110 = arith.constant 0 : index
      %160 = vector.load %arg15[%c0_109, %c0_110] : memref<8x16xf32, #tpu.memory_space<vmem>>, vector<8x16xf32>
      tpu.vector_store %arg15[%c0_109, %c0_110], %159 {strides = array<i32>} : memref<8x16xf32, #tpu.memory_space<vmem>>, vector<8x16xf32>,
    } else {
    }
    %c0 = arith.constant 0 : index
    %c0_1 = arith.constant 0 : index
    %c0_2 = arith.constant 0 : index
    %3 = vector.load %arg4[%c0, %c0_1, %c0_2] : memref<1x8x32xf32, #tpu.memory_space<vmem>>, vector<1x8x32xf32>
    %4 = vector.shape_cast %3 : vector<1x8x32xf32> to vector<8x32xf32>
    %c0_3 = arith.constant 0 : index
    %c0_4 = arith.constant 0 : index
    %5 = vector.load %arg6[%c0_3, %c0_4] : memref<32x16xf32, #tpu.memory_space<vmem>>, vector<32x16xf32>
    %cst = arith.constant dense<0.000000e+00> : vector<8x16xf32>
    %6 = tpu.matmul %4, %5, %cst {dimension_numbers = #tpu.dot_dimension_numbers<[1], [0], [0], [1], [0, 0, 1, 1], [], []>} : vector<8x32xf32>, vector<32x16xf32>, vector<8x16xf32> -> vector<8x16xf32>
    %c0_5 = arith.constant 0 : index
    %c0_6 = arith.constant 0 : index
    %7 = vector.load %arg9[%c0_5, %c0_6] : memref<1x16xf32, #tpu.memory_space<vmem>>, vector<1x16xf32>
    %8 = vector.broadcast %7 : vector<1x16xf32> to vector<8x16xf32>
    %9 = arith.addf %6, %8 : vector<8x16xf32>
    %c0_7 = arith.constant 0 : index
    %c0_8 = arith.constant 0 : index
    %10 = vector.load %arg7[%c0_7, %c0_8] : memref<32x16xf32, #tpu.memory_space<vmem>>, vector<32x16xf32>
    %cst_9 = arith.constant dense<0.000000e+00> : vector<8x16xf32>
    %11 = tpu.matmul %4, %10, %cst_9 {dimension_numbers = #tpu.dot_dimension_numbers<[1], [0], [0], [1], [0, 0, 1, 1], [], []>} : vector<8x32xf32>, vector<32x16xf32>, vector<8x16xf32> -> vector<8x16xf32>
    %c0_10 = arith.constant 0 : index
    %c0_11 = arith.constant 0 : index
    %12 = vector.load %arg10[%c0_10, %c0_11] : memref<1x16xf32, #tpu.memory_space<vmem>>, vector<1x16xf32>
    %13 = vector.broadcast %12 : vector<1x16xf32> to vector<8x16xf32>
    %14 = arith.addf %11, %13 : vector<8x16xf32>
    %c0_12 = arith.constant 0 : index
    %c0_13 = arith.constant 0 : index
    %15 = vector.load %arg12[%c0_12, %c0_13] : memref<8x16xf32, #tpu.memory_space<vmem>>, vector<8x16xf32>
    %16 = vector.extract_strided_slice %15 {offsets = [0, 0], sizes = [8, 4], strides = [1, 1]} : vector<8x16xf32> to vector<8x4xf32>
    %17 = vector.extract_strided_slice %9 {offsets = [0, 0], sizes = [8, 4], strides = [1, 1]} : vector<8x16xf32> to vector<8x4xf32>
    %18 = vector.extract_strided_slice %14 {offsets = [0, 0], sizes = [8, 4], strides = [1, 1]} : vector<8x16xf32> to vector<8x4xf32>
    %cst_14 = arith.constant dense<0.000000e+00> : vector<8x8xf32>
    %19 = tpu.matmul %16, %17, %cst_14 {dimension_numbers = #tpu.dot_dimension_numbers<[1], [1], [0], [0], [0, 0, 1, 0], [], []>} : vector<8x4xf32>, vector<8x4xf32>, vector<8x8xf32> -> vector<8x8xf32>
    %c0_15 = arith.constant 0 : index
    %c0_16 = arith.constant 0 : index
    %c0_17 = arith.constant 0 : index
    %20 = vector.load %arg13[%c0_15, %c0_16, %c0_17] : memref<4x8x1xf32, #tpu.memory_space<vmem>>, vector<1x8x1xf32>
    %21 = vector.shape_cast %20 : vector<1x8x1xf32> to vector<8x1xf32>
    %c0_18 = arith.constant 0 : index
    %c0_19 = arith.constant 0 : index
    %c0_20 = arith.constant 0 : index
    %22 = vector.load %arg14[%c0_18, %c0_19, %c0_20] : memref<4x8x1xf32, #tpu.memory_space<vmem>>, vector<1x8x1xf32>
    %23 = vector.shape_cast %22 : vector<1x8x1xf32> to vector<8x1xf32>
    %cst_21 = arith.constant dense<0xFF800000> : vector<8xf32>
    %24 = vector.multi_reduction <maximumf>, %19, %cst_21 [1] : vector<8x8xf32> to vector<8xf32>
    %25 = vector.shape_cast %24 : vector<8xf32> to vector<8x1xf32>
    %26 = arith.maximumf %21, %25 : vector<8x1xf32>
    %27 = arith.subf %21, %26 : vector<8x1xf32>
    %28 = math.exp %27 : vector<8x1xf32>
    %29 = vector.broadcast %26 : vector<8x1xf32> to vector<8x8xf32>
    %30 = arith.subf %19, %29 : vector<8x8xf32>
    %31 = math.exp %30 : vector<8x8xf32>
    %32 = arith.mulf %28, %23 : vector<8x1xf32>
    %cst_22 = arith.constant dense<0.000000e+00> : vector<8xf32>
    %33 = vector.multi_reduction <add>, %31, %cst_22 [1] : vector<8x8xf32> to vector<8xf32>
    %34 = vector.shape_cast %33 : vector<8xf32> to vector<8x1xf32>
    %35 = arith.addf %32, %34 : vector<8x1xf32>
    %c0_23 = arith.constant 0 : index
    %c0_24 = arith.constant 0 : index
    %c0_25 = arith.constant 0 : index
    %36 = vector.load %arg14[%c0_23, %c0_24, %c0_25] : memref<4x8x1xf32, #tpu.memory_space<vmem>>, vector<1x8x1xf32>
    %37 = vector.shape_cast %36 : vector<1x8x1xf32> to vector<8x1xf32>
    %38 = vector.shape_cast %35 : vector<8x1xf32> to vector<1x8x1xf32>
    tpu.vector_store %arg14[%c0_23, %c0_24, %c0_25], %38 {strides = array<i32>} : memref<4x8x1xf32, #tpu.memory_space<vmem>>, vector<1x8x1xf32>,
    %c0_26 = arith.constant 0 : index
    %c0_27 = arith.constant 0 : index
    %c0_28 = arith.constant 0 : index
    %39 = vector.load %arg13[%c0_26, %c0_27, %c0_28] : memref<4x8x1xf32, #tpu.memory_space<vmem>>, vector<1x8x1xf32>
    %40 = vector.shape_cast %39 : vector<1x8x1xf32> to vector<8x1xf32>
    %41 = vector.shape_cast %26 : vector<8x1xf32> to vector<1x8x1xf32>
    tpu.vector_store %arg13[%c0_26, %c0_27, %c0_28], %41 {strides = array<i32>} : memref<4x8x1xf32, #tpu.memory_space<vmem>>, vector<1x8x1xf32>,
    %cst_29 = arith.constant dense<0.000000e+00> : vector<8x4xf32>
    %42 = tpu.matmul %31, %18, %cst_29 {dimension_numbers = #tpu.dot_dimension_numbers<[1], [0], [0], [1], [0, 0, 1, 1], [], []>} : vector<8x8xf32>, vector<8x4xf32>, vector<8x4xf32> -> vector<8x4xf32>
    %c0_30 = arith.constant 0 : index
    %c0_31 = arith.constant 0 : index
    %43 = vector.load %arg15[%c0_30, %c0_31] : memref<8x16xf32, #tpu.memory_space<vmem>>, vector<8x4xf32>
    %44 = vector.broadcast %28 : vector<8x1xf32> to vector<8x4xf32>
    %45 = arith.mulf %44, %43 : vector<8x4xf32>
    %46 = arith.addf %45, %42 : vector<8x4xf32>
    %c0_32 = arith.constant 0 : index
    %c0_33 = arith.constant 0 : index
    %47 = vector.load %arg15[%c0_32, %c0_33] : memref<8x16xf32, #tpu.memory_space<vmem>>, vector<8x4xf32>
    tpu.vector_store %arg15[%c0_32, %c0_33], %46 {strides = array<i32>} : memref<8x16xf32, #tpu.memory_space<vmem>>, vector<8x4xf32>,
    %48 = vector.extract_strided_slice %15 {offsets = [0, 4], sizes = [8, 4], strides = [1, 1]} : vector<8x16xf32> to vector<8x4xf32>
    %49 = vector.extract_strided_slice %9 {offsets = [0, 4], sizes = [8, 4], strides = [1, 1]} : vector<8x16xf32> to vector<8x4xf32>
    %50 = vector.extract_strided_slice %14 {offsets = [0, 4], sizes = [8, 4], strides = [1, 1]} : vector<8x16xf32> to vector<8x4xf32>
    %cst_34 = arith.constant dense<0.000000e+00> : vector<8x8xf32>
    %51 = tpu.matmul %48, %49, %cst_34 {dimension_numbers = #tpu.dot_dimension_numbers<[1], [1], [0], [0], [0, 0, 1, 0], [], []>} : vector<8x4xf32>, vector<8x4xf32>, vector<8x8xf32> -> vector<8x8xf32>
    %c1 = arith.constant 1 : index
    %c0_35 = arith.constant 0 : index
    %c0_36 = arith.constant 0 : index
    %52 = vector.load %arg13[%c1, %c0_35, %c0_36] : memref<4x8x1xf32, #tpu.memory_space<vmem>>, vector<1x8x1xf32>
    %53 = vector.shape_cast %52 : vector<1x8x1xf32> to vector<8x1xf32>
    %c1_37 = arith.constant 1 : index
    %c0_38 = arith.constant 0 : index
    %c0_39 = arith.constant 0 : index
    %54 = vector.load %arg14[%c1_37, %c0_38, %c0_39] : memref<4x8x1xf32, #tpu.memory_space<vmem>>, vector<1x8x1xf32>
    %55 = vector.shape_cast %54 : vector<1x8x1xf32> to vector<8x1xf32>
    %cst_40 = arith.constant dense<0xFF800000> : vector<8xf32>
    %56 = vector.multi_reduction <maximumf>, %51, %cst_40 [1] : vector<8x8xf32> to vector<8xf32>
    %57 = vector.shape_cast %56 : vector<8xf32> to vector<8x1xf32>
    %58 = arith.maximumf %53, %57 : vector<8x1xf32>
    %59 = arith.subf %53, %58 : vector<8x1xf32>
    %60 = math.exp %59 : vector<8x1xf32>
    %61 = vector.broadcast %58 : vector<8x1xf32> to vector<8x8xf32>
    %62 = arith.subf %51, %61 : vector<8x8xf32>
    %63 = math.exp %62 : vector<8x8xf32>
    %64 = arith.mulf %60, %55 : vector<8x1xf32>
    %cst_41 = arith.constant dense<0.000000e+00> : vector<8xf32>
    %65 = vector.multi_reduction <add>, %63, %cst_41 [1] : vector<8x8xf32> to vector<8xf32>
    %66 = vector.shape_cast %65 : vector<8xf32> to vector<8x1xf32>
    %67 = arith.addf %64, %66 : vector<8x1xf32>
    %c1_42 = arith.constant 1 : index
    %c0_43 = arith.constant 0 : index
    %c0_44 = arith.constant 0 : index
    %68 = vector.load %arg14[%c1_42, %c0_43, %c0_44] : memref<4x8x1xf32, #tpu.memory_space<vmem>>, vector<1x8x1xf32>
    %69 = vector.shape_cast %68 : vector<1x8x1xf32> to vector<8x1xf32>
    %70 = vector.shape_cast %67 : vector<8x1xf32> to vector<1x8x1xf32>
    tpu.vector_store %arg14[%c1_42, %c0_43, %c0_44], %70 {strides = array<i32>} : memref<4x8x1xf32, #tpu.memory_space<vmem>>, vector<1x8x1xf32>,
    %c1_45 = arith.constant 1 : index
    %c0_46 = arith.constant 0 : index
    %c0_47 = arith.constant 0 : index
    %71 = vector.load %arg13[%c1_45, %c0_46, %c0_47] : memref<4x8x1xf32, #tpu.memory_space<vmem>>, vector<1x8x1xf32>
    %72 = vector.shape_cast %71 : vector<1x8x1xf32> to vector<8x1xf32>
    %73 = vector.shape_cast %58 : vector<8x1xf32> to vector<1x8x1xf32>
    tpu.vector_store %arg13[%c1_45, %c0_46, %c0_47], %73 {strides = array<i32>} : memref<4x8x1xf32, #tpu.memory_space<vmem>>, vector<1x8x1xf32>,
    %cst_48 = arith.constant dense<0.000000e+00> : vector<8x4xf32>
    %74 = tpu.matmul %63, %50, %cst_48 {dimension_numbers = #tpu.dot_dimension_numbers<[1], [0], [0], [1], [0, 0, 1, 1], [], []>} : vector<8x8xf32>, vector<8x4xf32>, vector<8x4xf32> -> vector<8x4xf32>
    %c0_49 = arith.constant 0 : index
    %c4 = arith.constant 4 : index
    %75 = vector.load %arg15[%c0_49, %c4] : memref<8x16xf32, #tpu.memory_space<vmem>>, vector<8x4xf32>
    %76 = vector.broadcast %60 : vector<8x1xf32> to vector<8x4xf32>
    %77 = arith.mulf %76, %75 : vector<8x4xf32>
    %78 = arith.addf %77, %74 : vector<8x4xf32>
    %c0_50 = arith.constant 0 : index
    %c4_51 = arith.constant 4 : index
    %79 = vector.load %arg15[%c0_50, %c4_51] : memref<8x16xf32, #tpu.memory_space<vmem>>, vector<8x4xf32>
    tpu.vector_store %arg15[%c0_50, %c4_51], %78 {strides = array<i32>} : memref<8x16xf32, #tpu.memory_space<vmem>>, vector<8x4xf32>,
    %80 = vector.extract_strided_slice %15 {offsets = [0, 8], sizes = [8, 4], strides = [1, 1]} : vector<8x16xf32> to vector<8x4xf32>
    %81 = vector.extract_strided_slice %9 {offsets = [0, 8], sizes = [8, 4], strides = [1, 1]} : vector<8x16xf32> to vector<8x4xf32>
    %82 = vector.extract_strided_slice %14 {offsets = [0, 8], sizes = [8, 4], strides = [1, 1]} : vector<8x16xf32> to vector<8x4xf32>
    %cst_52 = arith.constant dense<0.000000e+00> : vector<8x8xf32>
    %83 = tpu.matmul %80, %81, %cst_52 {dimension_numbers = #tpu.dot_dimension_numbers<[1], [1], [0], [0], [0, 0, 1, 0], [], []>} : vector<8x4xf32>, vector<8x4xf32>, vector<8x8xf32> -> vector<8x8xf32>
    %c2 = arith.constant 2 : index
    %c0_53 = arith.constant 0 : index
    %c0_54 = arith.constant 0 : index
    %84 = vector.load %arg13[%c2, %c0_53, %c0_54] : memref<4x8x1xf32, #tpu.memory_space<vmem>>, vector<1x8x1xf32>
    %85 = vector.shape_cast %84 : vector<1x8x1xf32> to vector<8x1xf32>
    %c2_55 = arith.constant 2 : index
    %c0_56 = arith.constant 0 : index
    %c0_57 = arith.constant 0 : index
    %86 = vector.load %arg14[%c2_55, %c0_56, %c0_57] : memref<4x8x1xf32, #tpu.memory_space<vmem>>, vector<1x8x1xf32>
    %87 = vector.shape_cast %86 : vector<1x8x1xf32> to vector<8x1xf32>
    %cst_58 = arith.constant dense<0xFF800000> : vector<8xf32>
    %88 = vector.multi_reduction <maximumf>, %83, %cst_58 [1] : vector<8x8xf32> to vector<8xf32>
    %89 = vector.shape_cast %88 : vector<8xf32> to vector<8x1xf32>
    %90 = arith.maximumf %85, %89 : vector<8x1xf32>
    %91 = arith.subf %85, %90 : vector<8x1xf32>
    %92 = math.exp %91 : vector<8x1xf32>
    %93 = vector.broadcast %90 : vector<8x1xf32> to vector<8x8xf32>
    %94 = arith.subf %83, %93 : vector<8x8xf32>
    %95 = math.exp %94 : vector<8x8xf32>
    %96 = arith.mulf %92, %87 : vector<8x1xf32>
    %cst_59 = arith.constant dense<0.000000e+00> : vector<8xf32>
    %97 = vector.multi_reduction <add>, %95, %cst_59 [1] : vector<8x8xf32> to vector<8xf32>
    %98 = vector.shape_cast %97 : vector<8xf32> to vector<8x1xf32>
    %99 = arith.addf %96, %98 : vector<8x1xf32>
    %c2_60 = arith.constant 2 : index
    %c0_61 = arith.constant 0 : index
    %c0_62 = arith.constant 0 : index
    %100 = vector.load %arg14[%c2_60, %c0_61, %c0_62] : memref<4x8x1xf32, #tpu.memory_space<vmem>>, vector<1x8x1xf32>
    %101 = vector.shape_cast %100 : vector<1x8x1xf32> to vector<8x1xf32>
    %102 = vector.shape_cast %99 : vector<8x1xf32> to vector<1x8x1xf32>
    tpu.vector_store %arg14[%c2_60, %c0_61, %c0_62], %102 {strides = array<i32>} : memref<4x8x1xf32, #tpu.memory_space<vmem>>, vector<1x8x1xf32>,
    %c2_63 = arith.constant 2 : index
    %c0_64 = arith.constant 0 : index
    %c0_65 = arith.constant 0 : index
    %103 = vector.load %arg13[%c2_63, %c0_64, %c0_65] : memref<4x8x1xf32, #tpu.memory_space<vmem>>, vector<1x8x1xf32>
    %104 = vector.shape_cast %103 : vector<1x8x1xf32> to vector<8x1xf32>
    %105 = vector.shape_cast %90 : vector<8x1xf32> to vector<1x8x1xf32>
    tpu.vector_store %arg13[%c2_63, %c0_64, %c0_65], %105 {strides = array<i32>} : memref<4x8x1xf32, #tpu.memory_space<vmem>>, vector<1x8x1xf32>,
    %cst_66 = arith.constant dense<0.000000e+00> : vector<8x4xf32>
    %106 = tpu.matmul %95, %82, %cst_66 {dimension_numbers = #tpu.dot_dimension_numbers<[1], [0], [0], [1], [0, 0, 1, 1], [], []>} : vector<8x8xf32>, vector<8x4xf32>, vector<8x4xf32> -> vector<8x4xf32>
    %c0_67 = arith.constant 0 : index
    %c8 = arith.constant 8 : index
    %107 = vector.load %arg15[%c0_67, %c8] : memref<8x16xf32, #tpu.memory_space<vmem>>, vector<8x4xf32>
    %108 = vector.broadcast %92 : vector<8x1xf32> to vector<8x4xf32>
    %109 = arith.mulf %108, %107 : vector<8x4xf32>
    %110 = arith.addf %109, %106 : vector<8x4xf32>
    %c0_68 = arith.constant 0 : index
    %c8_69 = arith.constant 8 : index
    %111 = vector.load %arg15[%c0_68, %c8_69] : memref<8x16xf32, #tpu.memory_space<vmem>>, vector<8x4xf32>
    tpu.vector_store %arg15[%c0_68, %c8_69], %110 {strides = array<i32>} : memref<8x16xf32, #tpu.memory_space<vmem>>, vector<8x4xf32>,
    %112 = vector.extract_strided_slice %15 {offsets = [0, 12], sizes = [8, 4], strides = [1, 1]} : vector<8x16xf32> to vector<8x4xf32>
    %113 = vector.extract_strided_slice %9 {offsets = [0, 12], sizes = [8, 4], strides = [1, 1]} : vector<8x16xf32> to vector<8x4xf32>
    %114 = vector.extract_strided_slice %14 {offsets = [0, 12], sizes = [8, 4], strides = [1, 1]} : vector<8x16xf32> to vector<8x4xf32>
    %cst_70 = arith.constant dense<0.000000e+00> : vector<8x8xf32>
    %115 = tpu.matmul %112, %113, %cst_70 {dimension_numbers = #tpu.dot_dimension_numbers<[1], [1], [0], [0], [0, 0, 1, 0], [], []>} : vector<8x4xf32>, vector<8x4xf32>, vector<8x8xf32> -> vector<8x8xf32>
    %c3 = arith.constant 3 : index
    %c0_71 = arith.constant 0 : index
    %c0_72 = arith.constant 0 : index
    %116 = vector.load %arg13[%c3, %c0_71, %c0_72] : memref<4x8x1xf32, #tpu.memory_space<vmem>>, vector<1x8x1xf32>
    %117 = vector.shape_cast %116 : vector<1x8x1xf32> to vector<8x1xf32>
    %c3_73 = arith.constant 3 : index
    %c0_74 = arith.constant 0 : index
    %c0_75 = arith.constant 0 : index
    %118 = vector.load %arg14[%c3_73, %c0_74, %c0_75] : memref<4x8x1xf32, #tpu.memory_space<vmem>>, vector<1x8x1xf32>
    %119 = vector.shape_cast %118 : vector<1x8x1xf32> to vector<8x1xf32>
    %cst_76 = arith.constant dense<0xFF800000> : vector<8xf32>
    %120 = vector.multi_reduction <maximumf>, %115, %cst_76 [1] : vector<8x8xf32> to vector<8xf32>
    %121 = vector.shape_cast %120 : vector<8xf32> to vector<8x1xf32>
    %122 = arith.maximumf %117, %121 : vector<8x1xf32>
    %123 = arith.subf %117, %122 : vector<8x1xf32>
    %124 = math.exp %123 : vector<8x1xf32>
    %125 = vector.broadcast %122 : vector<8x1xf32> to vector<8x8xf32>
    %126 = arith.subf %115, %125 : vector<8x8xf32>
    %127 = math.exp %126 : vector<8x8xf32>
    %128 = arith.mulf %124, %119 : vector<8x1xf32>
    %cst_77 = arith.constant dense<0.000000e+00> : vector<8xf32>
    %129 = vector.multi_reduction <add>, %127, %cst_77 [1] : vector<8x8xf32> to vector<8xf32>
    %130 = vector.shape_cast %129 : vector<8xf32> to vector<8x1xf32>
    %131 = arith.addf %128, %130 : vector<8x1xf32>
    %c3_78 = arith.constant 3 : index
    %c0_79 = arith.constant 0 : index
    %c0_80 = arith.constant 0 : index
    %132 = vector.load %arg14[%c3_78, %c0_79, %c0_80] : memref<4x8x1xf32, #tpu.memory_space<vmem>>, vector<1x8x1xf32>
    %133 = vector.shape_cast %132 : vector<1x8x1xf32> to vector<8x1xf32>
    %134 = vector.shape_cast %131 : vector<8x1xf32> to vector<1x8x1xf32>
    tpu.vector_store %arg14[%c3_78, %c0_79, %c0_80], %134 {strides = array<i32>} : memref<4x8x1xf32, #tpu.memory_space<vmem>>, vector<1x8x1xf32>,
    %c3_81 = arith.constant 3 : index
    %c0_82 = arith.constant 0 : index
    %c0_83 = arith.constant 0 : index
    %135 = vector.load %arg13[%c3_81, %c0_82, %c0_83] : memref<4x8x1xf32, #tpu.memory_space<vmem>>, vector<1x8x1xf32>
    %136 = vector.shape_cast %135 : vector<1x8x1xf32> to vector<8x1xf32>
    %137 = vector.shape_cast %122 : vector<8x1xf32> to vector<1x8x1xf32>
    tpu.vector_store %arg13[%c3_81, %c0_82, %c0_83], %137 {strides = array<i32>} : memref<4x8x1xf32, #tpu.memory_space<vmem>>, vector<1x8x1xf32>,
    %cst_84 = arith.constant dense<0.000000e+00> : vector<8x4xf32>
    %138 = tpu.matmul %127, %114, %cst_84 {dimension_numbers = #tpu.dot_dimension_numbers<[1], [0], [0], [1], [0, 0, 1, 1], [], []>} : vector<8x8xf32>, vector<8x4xf32>, vector<8x4xf32> -> vector<8x4xf32>
    %c0_85 = arith.constant 0 : index
    %c12 = arith.constant 12 : index
    %139 = vector.load %arg15[%c0_85, %c12] : memref<8x16xf32, #tpu.memory_space<vmem>>, vector<8x4xf32>
    %140 = vector.broadcast %124 : vector<8x1xf32> to vector<8x4xf32>
    %141 = arith.mulf %140, %139 : vector<8x4xf32>
    %142 = arith.addf %141, %138 : vector<8x4xf32>
    %c0_86 = arith.constant 0 : index
    %c12_87 = arith.constant 12 : index
    %143 = vector.load %arg15[%c0_86, %c12_87] : memref<8x16xf32, #tpu.memory_space<vmem>>, vector<8x4xf32>
    tpu.vector_store %arg15[%c0_86, %c12_87], %142 {strides = array<i32>} : memref<8x16xf32, #tpu.memory_space<vmem>>, vector<8x4xf32>,
    %c0_i32_88 = arith.constant 0 : i32
    %144 = arith.cmpi eq, %arg2, %c0_i32_88 : i32
    %145 = arith.extui %144 : i1 to i32
    %c0_i32_89 = arith.constant 0 : i32
    %146 = arith.cmpi ne, %145, %c0_i32_89 : i32
    scf.if %146 {
      %c0_90 = arith.constant 0 : index
      %c0_91 = arith.constant 0 : index
      %c0_92 = arith.constant 0 : index
      %147 = vector.load %arg14[%c0_90, %c0_91, %c0_92] : memref<4x8x1xf32, #tpu.memory_space<vmem>>, vector<1x8x1xf32>
      %148 = vector.shape_cast %147 : vector<1x8x1xf32> to vector<8x1xf32>
      %149 = tpu.reciprocal %148 {approx = true} : vector<8x1xf32> -> vector<8x1xf32>
      %c0_93 = arith.constant 0 : index
      %c0_94 = arith.constant 0 : index
      %150 = vector.load %arg15[%c0_93, %c0_94] : memref<8x16xf32, #tpu.memory_space<vmem>>, vector<8x4xf32>
      %151 = vector.broadcast %149 : vector<8x1xf32> to vector<8x4xf32>
      %152 = arith.mulf %150, %151 : vector<8x4xf32>
      %c0_95 = arith.constant 0 : index
      %c0_96 = arith.constant 0 : index
      %c0_97 = arith.constant 0 : index
      %153 = vector.load %arg11[%c0_95, %c0_96, %c0_97] : memref<1x8x16xf32, #tpu.memory_space<vmem>>, vector<1x8x4xf32>
      %154 = vector.shape_cast %153 : vector<1x8x4xf32> to vector<8x4xf32>
      %155 = vector.shape_cast %152 : vector<8x4xf32> to vector<1x8x4xf32>
      tpu.vector_store %arg11[%c0_95, %c0_96, %c0_97], %155 {strides = array<i32>} : memref<1x8x16xf32, #tpu.memory_space<vmem>>, vector<1x8x4xf32>,
      %c1_98 = arith.constant 1 : index
      %c0_99 = arith.constant 0 : index
      %c0_100 = arith.constant 0 : index
      %156 = vector.load %arg14[%c1_98, %c0_99, %c0_100] : memref<4x8x1xf32, #tpu.memory_space<vmem>>, vector<1x8x1xf32>
      %157 = vector.shape_cast %156 : vector<1x8x1xf32> to vector<8x1xf32>
      %158 = tpu.reciprocal %157 {approx = true} : vector<8x1xf32> -> vector<8x1xf32>
      %c0_101 = arith.constant 0 : index
      %c4_102 = arith.constant 4 : index
      %159 = vector.load %arg15[%c0_101, %c4_102] : memref<8x16xf32, #tpu.memory_space<vmem>>, vector<8x4xf32>
      %160 = vector.broadcast %158 : vector<8x1xf32> to vector<8x4xf32>
      %161 = arith.mulf %159, %160 : vector<8x4xf32>
      %c0_103 = arith.constant 0 : index
      %c0_104 = arith.constant 0 : index
      %c4_105 = arith.constant 4 : index
      %162 = vector.load %arg11[%c0_103, %c0_104, %c4_105] : memref<1x8x16xf32, #tpu.memory_space<vmem>>, vector<1x8x4xf32>
      %163 = vector.shape_cast %162 : vector<1x8x4xf32> to vector<8x4xf32>
      %164 = vector.shape_cast %161 : vector<8x4xf32> to vector<1x8x4xf32>
      tpu.vector_store %arg11[%c0_103, %c0_104, %c4_105], %164 {strides = array<i32>} : memref<1x8x16xf32, #tpu.memory_space<vmem>>, vector<1x8x4xf32>,
      %c2_106 = arith.constant 2 : index
      %c0_107 = arith.constant 0 : index
      %c0_108 = arith.constant 0 : index
      %165 = vector.load %arg14[%c2_106, %c0_107, %c0_108] : memref<4x8x1xf32, #tpu.memory_space<vmem>>, vector<1x8x1xf32>
      %166 = vector.shape_cast %165 : vector<1x8x1xf32> to vector<8x1xf32>
      %167 = tpu.reciprocal %166 {approx = true} : vector<8x1xf32> -> vector<8x1xf32>
      %c0_109 = arith.constant 0 : index
      %c8_110 = arith.constant 8 : index
      %168 = vector.load %arg15[%c0_109, %c8_110] : memref<8x16xf32, #tpu.memory_space<vmem>>, vector<8x4xf32>
      %169 = vector.broadcast %167 : vector<8x1xf32> to vector<8x4xf32>
      %170 = arith.mulf %168, %169 : vector<8x4xf32>
      %c0_111 = arith.constant 0 : index
      %c0_112 = arith.constant 0 : index
      %c8_113 = arith.constant 8 : index
      %171 = vector.load %arg11[%c0_111, %c0_112, %c8_113] : memref<1x8x16xf32, #tpu.memory_space<vmem>>, vector<1x8x4xf32>
      %172 = vector.shape_cast %171 : vector<1x8x4xf32> to vector<8x4xf32>
      %173 = vector.shape_cast %170 : vector<8x4xf32> to vector<1x8x4xf32>
      tpu.vector_store %arg11[%c0_111, %c0_112, %c8_113], %173 {strides = array<i32>} : memref<1x8x16xf32, #tpu.memory_space<vmem>>, vector<1x8x4xf32>,
      %c3_114 = arith.constant 3 : index
      %c0_115 = arith.constant 0 : index
      %c0_116 = arith.constant 0 : index
      %174 = vector.load %arg14[%c3_114, %c0_115, %c0_116] : memref<4x8x1xf32, #tpu.memory_space<vmem>>, vector<1x8x1xf32>
      %175 = vector.shape_cast %174 : vector<1x8x1xf32> to vector<8x1xf32>
      %176 = tpu.reciprocal %175 {approx = true} : vector<8x1xf32> -> vector<8x1xf32>
      %c0_117 = arith.constant 0 : index
      %c12_118 = arith.constant 12 : index
      %177 = vector.load %arg15[%c0_117, %c12_118] : memref<8x16xf32, #tpu.memory_space<vmem>>, vector<8x4xf32>
      %178 = vector.broadcast %176 : vector<8x1xf32> to vector<8x4xf32>
      %179 = arith.mulf %177, %178 : vector<8x4xf32>
      %c0_119 = arith.constant 0 : index
      %c0_120 = arith.constant 0 : index
      %c12_121 = arith.constant 12 : index
      %180 = vector.load %arg11[%c0_119, %c0_120, %c12_121] : memref<1x8x16xf32, #tpu.memory_space<vmem>>, vector<1x8x4xf32>
      %181 = vector.shape_cast %180 : vector<1x8x4xf32> to vector<8x4xf32>
      %182 = vector.shape_cast %179 : vector<8x4xf32> to vector<1x8x4xf32>
      tpu.vector_store %arg11[%c0_119, %c0_120, %c12_121], %182 {strides = array<i32>} : memref<1x8x16xf32, #tpu.memory_space<vmem>>, vector<1x8x4xf32>,
    } else {
    }
    return
  }
  func.func @transform_0(%arg0: i32, %arg1: i32, %arg2: i32) -> (i32, i32, i32) {
    %c0_i32 = arith.constant 0 : i32
    %c0_i32_0 = arith.constant 0 : i32
    return %arg0, %arg1, %c0_i32 : i32, i32, i32
  }
  func.func @transform_1(%arg0: i32, %arg1: i32, %arg2: i32) -> (i32, i32, i32) {
    %c0_i32 = arith.constant 0 : i32
    %c0_i32_0 = arith.constant 0 : i32
    return %arg0, %arg2, %c0_i32 : i32, i32, i32
  }
  func.func @transform_2(%arg0: i32, %arg1: i32, %arg2: i32) -> (i32, i32) {
    %c0_i32 = arith.constant 0 : i32
    %c0_i32_0 = arith.constant 0 : i32
    %c0_i32_1 = arith.constant 0 : i32
    return %c0_i32, %c0_i32_0 : i32, i32
  }
  func.func @transform_3(%arg0: i32, %arg1: i32, %arg2: i32) -> (i32, i32) {
    %c0_i32 = arith.constant 0 : i32
    %c0_i32_0 = arith.constant 0 : i32
    %c0_i32_1 = arith.constant 0 : i32
    return %c0_i32, %c0_i32_0 : i32, i32
  }
  func.func @transform_4(%arg0: i32, %arg1: i32, %arg2: i32) -> (i32, i32) {
    %c0_i32 = arith.constant 0 : i32
    %c0_i32_0 = arith.constant 0 : i32
    %c0_i32_1 = arith.constant 0 : i32
    return %c0_i32, %c0_i32_0 : i32, i32
  }
  func.func @transform_5(%arg0: i32, %arg1: i32, %arg2: i32) -> (i32, i32) {
    %c0_i32 = arith.constant 0 : i32
    %c0_i32_0 = arith.constant 0 : i32
    %c0_i32_1 = arith.constant 0 : i32
    return %c0_i32, %c0_i32_0 : i32, i32
  }
  func.func @transform_6(%arg0: i32, %arg1: i32, %arg2: i32) -> (i32, i32) {
    %c0_i32 = arith.constant 0 : i32
    %c0_i32_0 = arith.constant 0 : i32
    %c0_i32_1 = arith.constant 0 : i32
    return %c0_i32, %c0_i32_0 : i32, i32
  }
  func.func @transform_7(%arg0: i32, %arg1: i32, %arg2: i32) -> (i32, i32) {
    %c0_i32 = arith.constant 0 : i32
    %c0_i32_0 = arith.constant 0 : i32
    %c0_i32_1 = arith.constant 0 : i32
    return %c0_i32, %c0_i32_0 : i32, i32
  }
  func.func @transform_8(%arg0: i32, %arg1: i32, %arg2: i32) -> (i32, i32, i32) {
    %c0_i32 = arith.constant 0 : i32
    %c0_i32_0 = arith.constant 0 : i32
    return %arg0, %arg1, %c0_i32 : i32, i32, i32
  }
}

</mosaic_0001>

<bundles_post_ra>
// kernel: tpu_custom_call.1
= control target key start
LH: loop header
LB: loop body
LE: loop exit
PB: predicated region body
PF: predicated region fallthrough
CT: control target
= control target key end

     0   :  { %13 = vsyncpa [#allocation7], 0  ;;  %s2206_s0 = inlined_call_operand.vmem [shape: f32[2,8,32], index: 0, kind: input, shape index: {}]   ;;  %s2207_s1 = inlined_call_operand.vmem [shape: f32[2,8,32], index: 1, kind: input, shape index: {}]   ;;  %s2208_s2 = inlined_call_operand.vmem [shape: f32[32,16], index: 2, kind: input, shape index: {}]   ;;  %s2209_s3 = inlined_call_operand.vmem [shape: f32[32,16], index: 3, kind: input, shape index: {}]   ;;  %s2210_s4 = inlined_call_operand.vmem [shape: f32[32,16], index: 4, kind: input, shape index: {}]   ;;  %s2211_s5 = inlined_call_operand.vmem [shape: f32[1,16], index: 5, kind: input, shape index: {}]   ;;  %s2212_s6 = inlined_call_operand.vmem [shape: f32[1,16], index: 6, kind: input, shape index: {}]   ;;  %s2213_s7 = inlined_call_operand.vmem [shape: f32[1,16], index: 7, kind: input, shape index: {}]   ;;  %s2214_s8 = inlined_call_operand.hbm [shape: f32[2,8,16], index: 8, kind: output, shape index: {}]  }
   0x1   :  { %15 = vsyncpa [#allocation7 + $0x1], 0  ;;  %s1927_s27 = smov 0   ;;  %s1929_s28 = smov 0  }
   0x2   :  { %s1931_s29 = smov 0   ;;  %s1933_s30 = smov 0  }
   0x3   :  { %s1935_s9 = smov 0   ;;  %s1937_s10 = smov 0  }
   0x4 LB: > { %s1546_s11 = sadd.s32 4294967295, %s1868_s10   ;;  %s1547_s12 = sadd.s32 4294967294, %s1868_s10   ;;  %s1868_s10 = sphi %s1937_s10, %s21_s10   ;;  %s1864_s9 = sphi %s1935_s9, %s2221_s9   ;;  %s1860_s30 = sphi %s1933_s30, %s2220_s30   ;;  %s1856_s29 = sphi %s1931_s29, %s2219_s29   ;;  %s1852_s28 = sphi %s1929_s28, %s2218_s28   ;;  %s1848_s27 = sphi %s1927_s27, %s2217_s27  }
   0x5   : > { %s40_s13 = sadd.s32 1, %s1864_s9  ;;  %s231_s14 = sadd.s32 1, %s1856_s29 }
   0x6   : > { %p42_p0 = scmp.ge.s32.totalorder %s40_s13, 2  ;;  %p241_p1 = scmp.ne.s32.totalorder %s1856_s29, %s1852_s28 }
   0x7   : > { %p242_p2 = scmp.eq.s32.totalorder %s1546_s11, 1  ;;  %p247_p3 = scmp.ne.s32.totalorder %s1852_s28, %s1848_s27 }
   0x8   : > { %s2223_s13 = smov (%p42_p0, %s40_s13), 0  ;;  %p248_p5 = scmp.eq.s32.totalorder %s1547_s12, 1 }
   0x9   : > { %p1967_p4 = por %p242_p2, %p241_p1  ;;  %s226_s16 = ssub.s32 %s1864_s9, %s2223_s13 }
   0xa   : > { %p1550_p6 = scmp.ge.s32.totalorder %s1868_s10, 1  ;;  %p229_p7 = scmp.eq.s32.totalorder %s226_s16, 0 }
   0xb   : > { %p1974_p8 = por %p248_p5, %p247_p3  ;;  %p304_p9 = scmp.lt.s32.totalorder %s1868_s10, 3 }
   0xc   : > { %s1980_s18 = scalar_select %p229_p7, %s1856_s29, %s231_s14  }
   0xd   : > { %p305_p10 = pnand %p1550_p6, %p304_p9 }
   0xe   : > { %v366_v0 = vld [vmem:[%s2208_s2] sm:$0xff] (!%p305_p10)  ;;  %v367_v1 = vld [vmem:[%s2208_s2 + $0x8] sm:$0xff] (!%p305_p10)  ;;  %v1870_v3 = vmov (!%p305_p10), 0.0|0.0   ;;  %v368_v6 = vld [vmem:[%s2208_s2 + $0x10] sm:$0xff] (!%p305_p10)  ;;  %p347_p11 = scmp.lt.s32.totalorder (!%p305_p10), %s1860_s30, 1  ;;  %vm1871_vm0 = vmmov (!%p305_p10), 0  }
   0xf   : > { %308 = sbr.rel (%p305_p10) target bundleno = 1249 (0x4e1), region = 52  ;;  %v464_v2 = vld [vmem:[%s2209_s3] sm:$0xff] (!%p305_p10)  ;;  %1680 = vmatprep.subr.bf16.mxu0 (!%p305_p10), %v1870_v3  ;;  %v1681_v4 = vpack.c.bf16 (!%p305_p10), %v367_v1, %v366_v0  ;;  %1686 = vmatprep.subr.bf16.mxu1 (!%p305_p10), %v1870_v3  ;;  %v465_v5 = vld [vmem:[%s2209_s3 + $0x8] sm:$0xff] (!%p305_p10)  ;;  %v369_v7 = vld [vmem:[%s2208_s2 + $0x18] sm:$0xff] (!%p305_p10)  ;;  %v1872_v9 = vmov (!%p305_p10), 0.0   ;;  %vm377_vm1 = vcmask (!%p305_p10), 261120  }
  0x10   : > { %v1687_v8 = vpack.c.bf16 (!%p305_p10), %v465_v5, %v464_v2  ;;  %1615 = vmatprep.mubr.msk.f32.mxu0 (!%p305_p10), %vm1871_vm0, %v1872_v9  ;;  %v466_v10 = vld [vmem:[%s2209_s3 + $0x10] sm:$0xff] (!%p305_p10)  ;;  %v467_v11 = vld [vmem:[%s2209_s3 + $0x18] sm:$0xff] (!%p305_p10)  ;;  %1626 = vmatprep.mubr.msk.f32.mxu1 (!%p305_p10), %vm1871_vm0, %v1872_v9  ;;  %v1684_v12 = vpack.c.bf16 (!%p305_p10), %v369_v7, %v368_v6  ;;  %vm451_vm2 = vcmask (!%p305_p10), 130048   ;;  %v549_v16 = vld [vmem:[%s2210_s4] sm:$0xff] (!%p305_p10)  ;;  %vm631_vm3 = vcmask (!%p305_p10), 31744   ;;  %s1873_s19 = smov (!%p305_p10), 120  }
  0x11   : > { %1682 = vmatpush3.bf16.msra.mxu0 (!%p305_p10), %v1681_v4  ;;  %v1690_v13 = vpack.c.bf16 (!%p305_p10), %v467_v11, %v466_v10  ;;  %462 = vst.msk [vmem:[#allocation5] sm:$0xff] (!%p305_p10), %vm451_vm2, %v1872_v9  ;;  %v550_v17 = vld [vmem:[%s2210_s4 + $0x8] sm:$0xff] (!%p305_p10)  ;;  %v551_v18 = vld [vmem:[%s2210_s4 + $0x10] sm:$0xff] (!%p305_p10)  ;;  %v552_v20 = vld [vmem:[%s2210_s4 + $0x18] sm:$0xff] (!%p305_p10)  ;;  %s1874_s20 = smov (!%p305_p10), 124   ;;  %s1875_s21 = smov (!%p305_p10), 116  }
  0x12   : > { %1683 = vmatprep.subr.bf16.mxu0 (!%p305_p10), %v1870_v3  ;;  %1688 = vmatpush3.bf16.msra.mxu1 (!%p305_p10), %v1687_v8  ;;  %v1693_v19 = vpack.c.bf16 (!%p305_p10), %v550_v17, %v549_v16  ;;  %v1696_v21 = vpack.c.bf16 (!%p305_p10), %v552_v20, %v551_v18  ;;  %v1554_v22 = vld [vmem:[%s2211_s5] ss:$0 sm:$0xff] (!%p305_p10)  ;;  %vm453_vm4 = vcmask (!%p305_p10), 7168   ;;  %v1876_v41 = vmov (!%p305_p10), -inf   ;;  %s1879_s25 = smov (!%p305_p10), 8   ;;  %s1880_s26 = smov (!%p305_p10), 12  }
  0x13   : > { %1689 = vmatprep.subr.bf16.mxu1 (!%p305_p10), %v1870_v3  ;;  %v1556_v23 = vld [vmem:[%s2212_s6] ss:$0 sm:$0xff] (!%p305_p10)  ;;  %454 = vst.msk [vmem:[#allocation3] sm:$0xff] (!%p305_p10), %vm453_vm4, %v1876_v41  ;;  %455 = vst.msk [vmem:[#allocation3 + $0x8] sm:$0xff] (!%p305_p10), %vm453_vm4, %v1876_v41  ;;  %vm710_vm5 = vcmask (!%p305_p10), 64512   ;;  %v1877_v45 = vmov (!%p305_p10), 0  }
  0x14   : > { %v1558_v31 = vld [vmem:[%s2213_s7] ss:$0 sm:$0xff] (!%p305_p10)  ;;  %456 = vst.msk [vmem:[#allocation3 + $0x10] sm:$0xff] (!%p305_p10), %vm453_vm4, %v1876_v41  ;;  %457 = vst.msk [vmem:[#allocation3 + $0x18] sm:$0xff] (!%p305_p10), %vm453_vm4, %v1876_v41  ;;  %1764 = vset.pattern.permute.xlu1 (!%p305_p10), %v1877_v45  ;;  %1765 = vset.pattern.permute.xlu0 (!%p305_p10), %v1877_v45  ;;  %vm1009_vm6 = vcmask (!%p305_p10), 64544   ;;  %vm1203_vm7 = vcmask (!%p305_p10), 97344  }
  0x15   : > { %1685 = vmatpush3.bf16.msra.mxu0 (!%p305_p10), %v1684_v12  ;;  %458 = vst.msk [vmem:[#allocation4] sm:$0xff] (!%p305_p10), %vm453_vm4, %v1872_v9  ;;  %459 = vst.msk [vmem:[#allocation4 + $0x8] sm:$0xff] (!%p305_p10), %vm453_vm4, %v1872_v9  ;;  %vm1397_vm8 = vcmask (!%p305_p10), 130144   ;;  %s1573_s14 = sshll.u32 (!%p305_p10), %s1860_s30, 7 }
  0x16   : > { %s348_s23 = scalar_select %p347_p11, %s1860_s30, 1  ;;  %1691 = vmatpush3.bf16.msra.mxu1 %v1690_v13  ;;  %1692 = vmatprep.subr.bf16.mxu0 %v1870_v3  ;;  %460 = vst.msk [vmem:[#allocation4 + $0x10] sm:$0xff] %vm453_vm4, %v1872_v9  ;;  %461 = vst.msk [vmem:[#allocation4 + $0x18] sm:$0xff] %vm453_vm4, %v1872_v9 }
  0x17   : > { %1640 = vmatprep.subr.mxu1 %v1872_v9  ;;  %s2157_s22 = scalar_lea.hbm %s2214_s8, %s1573_s14 }
  0x18   : > { %s1552_s24 = sshll.u32 %s348_s23, 3  ;;  %v807_v41 = vld [vmem:[#allocation5] sm:$0xff] }
  0x19   : > { %s353_s11 = scalar_lea.vmem %s2206_s0, %s1552_s24  ;;  %s360_s16 = scalar_lea.vmem %s2207_s1, %s1552_s24 }
  0x1a   : > { %v365_v14 = vld [vmem:[%s353_s11] sm:$0xff]  ;;  %v708_v55 = vld [vmem:[#allocation3] sm:$0xff]  ;;  %v895_v60 = vld [vmem:[#allocation3 + $0x8] sm:$0xff]  ;;  %s1878_s24 = smov 4   ;;  %s344_s11 = sand.u32 1, %s1852_s28  }
  0x1b   : > { %v463_v15 = vld [vmem:[%s360_s16] sm:$0xff]  ;;  %1616 = vmatmul.mubr.msk.f32.vlgmr.msra.gmra.mrb[0].mxu0 %vm377_vm1, %v365_v14  ;;  %v1090_v63 = vld [vmem:[#allocation3 + $0x10] sm:$0xff]  ;;  %s1551_s12 = sshll.u32 %s344_s11, 3  ;;  %s1443_s30 = scalar_lea.sflag [#allocation7], %s344_s11 }
  0x1c   : > { %1627 = vmatmul.mubr.msk.f32.vlgmr.msra.gmra.mrb[0].mxu1 %vm377_vm1, %v463_v15  ;;  %1637 = vmatprep.mubr.msk.f32.mxu0 %vm1871_vm0, %v1872_v9  ;;  %s346_s16 = scalar_lea.vmem [#allocation6], %s1551_s12 }
  0x1d   : > { %1642 = vmatprep.mubr.msk.f32.mxu1 %vm1871_vm0, %v1872_v9  ;;  %1694 = vmatpush3.bf16.msra.mxu0 %v1693_v19 }
  0x1e   : > { %1695 = vmatprep.subr.bf16.mxu0 %v1870_v3  ;;  %v2103_v3 = vld [vmem:[#allocation3 + $0x18] sm:$0xff] }
  0x21   : > { %1697 = vmatpush3.bf16.msra.mxu0 %v1696_v21 }
  0x22   : > { %1650 = vmatprep.subr.mxu0 %v1872_v9 }
  0x24   : > { %1638 = vmatmul.mubr.msk.f32.vlgmr.msra.gmra.mrb[2].mxu0 %vm377_vm1, %v463_v15 }
  0x25   : > { %1652 = vmatprep.mubr.msk.f32.mxu0 %vm1871_vm0, %v1872_v9 }
  0xee   : > { %v447_v24 = vpop.f32.mrb[0].mxu0 }
  0xef   : > { %v448_v25 = vadd.f32 %v1554_v22, %v447_v24  ;;  %v1617_v26 = vpop.f32.mrb[1].mxu0  ;;  %v545_v27 = vpop.f32.mrb[0].mxu1 }
  0xf0   : > { %v546_v28 = vadd.f32 %v1556_v23, %v545_v27  ;;  %v1628_v29 = vpop.f32.mrb[1].mxu1 }
  0xf1   : > { %452 = vst.msk [vmem:[#allocation2] sm:$0xff] %vm451_vm2, %v448_v25 }
  0xf2   : > { %1013 = vrot.lane.b32.xlu1 %v546_v28, %s1873_s19  ;;  %818 = vrot.lane.b32.xlu0 %v546_v28, %s1874_s20 }
  0xf3   : > { %1641 = vmatpush3.xpose.msk.msra.mxu1 %vm631_vm3, %v546_v28 }
  0xf4   : > { %1645 = vmatprep.subr.mxu1 %v1872_v9 }
  0xf7   : > { %v626_v32 = vpop.f32.mrb[2].mxu0 }
  0xf8   : > { %v630_v30 = vld [vmem:[#allocation2] sm:$0xff]  ;;  %v2064_v33 = vadd.f32 %v1558_v31, %v626_v32  ;;  %v1639_v34 = vpop.f32.mrb[3].mxu0 }
  0xf9   : > { %1011 = vrot.lane.b32.xlu1 %v630_v30, %s1873_s19  ;;  %816 = vrot.lane.b32.xlu0 %v630_v30, %s1874_s20 }
  0xfa   : > { %1643 = vmatmul.mubr.msk.f32.vlgmr.msra.gmra.mrb[2].mxu1 %vm631_vm3, %v630_v30 }
  0xfb   : > { %1647 = vmatprep.mubr.msk.f32.mxu1 %vm1871_vm0, %v1872_v9  ;;  %1646 = vmatpush3.msra.mxu1 %v2064_v33 }
  0xfc   : > { %1655 = vmatprep.subr.mxu1 %v1872_v9 }
  0xfd   : > { %1205 = vrot.lane.b32.xlu1 %v630_v30, %s1875_s21  ;;  %1207 = vrot.lane.b32.xlu0 %v546_v28, %s1875_s21 }
 0x164   : > { %v819_v35 = vpop.permute.xlu0 %818  ;;  %v1014_v36 = vpop.permute.xlu1 %1013 }
 0x165   : > { %1651 = vmatpush3.xpose.msk.msra.mxu0 %vm631_vm3, %v819_v35 }
 0x166   : > { %1660 = vmatprep.subr.mxu0 %v1872_v9 }
 0x16b   : > { %v817_v37 = vpop.permute.xlu0 %816  ;;  %v1012_v38 = vpop.permute.xlu1 %1011 }
 0x16c   : > { %1653 = vmatmul.mubr.msk.f32.vlgmr.msra.gmra.mrb[4].mxu0 %vm631_vm3, %v817_v37  ;;  %v709_v37 = vld [vmem:[#allocation4] sm:$0xff] }
 0x16d   : > { %1661 = vmatpush3.xpose.msk.msra.mxu0 %vm631_vm3, %v1014_v36  ;;  %1662 = vmatprep.mubr.msk.f32.mxu0 %vm1871_vm0, %v1872_v9 }
 0x16e   : > { %1670 = vmatprep.subr.mxu0 %v1872_v9 }
 0x16f   : > { %v1208_v39 = vpop.permute.xlu0 %1207  ;;  %v1206_v40 = vpop.permute.xlu1 %1205 }
 0x170   : > { %1663 = vmatmul.mubr.msk.f32.vlgmr.msra.gmra.mrb[6].mxu0 %vm631_vm3, %v1012_v38 }
 0x171   : > { %1671 = vmatpush3.xpose.msk.msra.mxu0 %vm631_vm3, %v1208_v39  ;;  %1672 = vmatprep.mubr.msk.f32.mxu0 %vm1871_vm0, %v1872_v9 }
 0x174   : > { %1673 = vmatmul.mubr.msk.f32.vlgmr.msra.gmra.mrb[8].mxu0 %vm631_vm3, %v1206_v40 }
 0x1cd   : > { %v704_v42 = vpop.f32.mrb[2].mxu1 }
 0x1ce   : > { %v1644_v43 = vpop.f32.mrb[3].mxu1  ;;  %v711_v44 = vsel %vm710_vm5, %v704_v42, -inf }
 0x1cf   : > { %712 = vmax.xlane.f32.xlu0 %v711_v44 }
 0x23f   : > { %v890_v46 = vpop.f32.mrb[4].mxu0 }
 0x240   : > { %v1654_v47 = vpop.f32.mrb[5].mxu0  ;;  %v898_v48 = vsel %vm710_vm5, %v890_v46, -inf }
 0x241   : > { %899 = vmax.xlane.f32.xlu1 %v898_v48  ;;  %v897_v47 = vld [vmem:[#allocation4 + $0x8] sm:$0xff] }
 0x243   : > { %v1085_v49 = vpop.f32.mrb[6].mxu0 }
 0x244   : > { %v1664_v50 = vpop.f32.mrb[7].mxu0  ;;  %v1093_v51 = vsel %vm710_vm5, %v1085_v49, -inf }
 0x245   : > { %1094 = vmax.xlane.f32.xlu0 %v1093_v51  ;;  %v1092_v50 = vld [vmem:[#allocation4 + $0x10] sm:$0xff] }
 0x247   : > { %v2095_v52 = vpop.f32.mrb[8].mxu0 }
 0x248   : > { %v1674_v53 = vpop.f32.mrb[9].mxu0  ;;  %v1287_v54 = vsel %vm710_vm5, %v2095_v52, -inf }
 0x249   : > { %1288 = vmax.xlane.f32.xlu0 %v1287_v54 }
 0x25c   : > { %v713_v56 = vpop.xlane.xlu0 %712 }
 0x25d   : > { %v714_v57 = vmax.f32 %v708_v55, %v713_v56  ;;  %v1286_v56 = vld [vmem:[#allocation4 + $0x18] sm:$0xff] }
 0x25f   : > { %v715_v58 = vsub.f32 %v708_v55, %v714_v57  ;;  %733 = vst.msk [vmem:[#allocation3] sm:$0xff] %vm453_vm4, %v714_v57  ;;  %720 = vperm.xlu1 %1764, %v714_v57  }
 0x261   : > { %v716_v59 = vmul.f32 1.442695, %v715_v58 }
 0x263   : > { %1766 = vpow2.f32 %v716_v59 }
 0x26d   : > { %v2101_v2 = vpop.eup %1766 }
 0x26e   : > { %v726_v38 = vmul.f32 %v2101_v2, %v709_v37 }
 0x2ce   : > { %v900_v61 = vpop.xlane.xlu1 %899 }
 0x2cf   : > { %v901_v62 = vmax.f32 %v895_v60, %v900_v61 }
 0x2d1   : > { %919 = vst.msk [vmem:[#allocation3 + $0x8] sm:$0xff] %vm453_vm4, %v901_v62  ;;  %907 = vperm.xlu0 %1765, %v901_v62   ;;  %v902_v12 = vsub.f32 %v895_v60, %v901_v62 }
 0x2d2   : > { %v1095_v0 = vpop.xlane.xlu0 %1094 }
 0x2d3   : > { %v1096_v1 = vmax.f32 %v1090_v63, %v1095_v0  ;;  %v903_v14 = vmul.f32 1.442695, %v902_v12 }
 0x2d5   : > { %1114 = vst.msk [vmem:[#allocation3 + $0x10] sm:$0xff] %vm453_vm4, %v1096_v1  ;;  %1102 = vperm.xlu1 %1764, %v1096_v1   ;;  %810 = vperm.xlu0 %1765, %v2101_v2   ;;  %v1097_v15 = vsub.f32 %v1090_v63, %v1096_v1 }
 0x2d6   : > { %v1289_v4 = vpop.xlane.xlu0 %1288 }
 0x2d7   : > { %v2108_v5 = vmax.f32 %v2103_v3, %v1289_v4  ;;  %v1098_v16 = vmul.f32 1.442695, %v1097_v15 }
 0x2d9   : > { %v1291_v6 = vsub.f32 %v2103_v3, %v2108_v5  ;;  %1308 = vst.msk [vmem:[#allocation3 + $0x18] sm:$0xff] %vm453_vm4, %v2108_v5  ;;  %921 = vrot.lane.b32.xlu1 %v2064_v33, %s1874_s20 }
 0x2dd   : > { %1296 = vperm.xlu1 %1764, %v2108_v5  }
 0x2de   : > { %v721_v7 = vpop.permute.xlu1 %720 }
 0x2df   : > { %v723_v8 = vsub.f32 %v704_v42, %v721_v7 }
 0x2e1   : > { %v724_v10 = vmul.f32 1.442695, %v723_v8  ;;  %1115 = vrot.lane.b32.xlu1 %v2064_v33, %s1873_s19  ;;  %s1457_s19 = sshll.u32 %s346_s16, 4  ;;  %s2159_s19 = int_to_ptr.vmem [resolvable:$true] %s1457_s19 }
 0x2e2   : > { %s1790_s23 = scalar_lea.vmem %s2159_s19, 128 }
 0x2e3   : > { %1768 = vpow2.f32 %v724_v10  ;;  %p1791_p12 = scmp.ne.s32.totalorder %s2159_s19, %s1790_s23 }
 0x2e4   : > { %1770 = vpow2.f32 %v903_v14 }
 0x2e5   : > { %1309 = vrot.lane.b32.xlu1 %v2064_v33, %s1875_s21  ;;  %1772 = vpow2.f32 %v1098_v16  ;;  %p1792_p13 = pnand %p1791_p12, %p1967_p4 }
 0x2e7   : > { %p1793_p0 = pneg %p1792_p13 }
 0x2ed   : > { %v1769_v11 = vpop.eup %1768 }
 0x2ee   : > { %1648 = vmatmul.mubr.msk.f32.vlgmr.msra.gmra.mrb[4].mxu1 %vm710_vm5, %v1769_v11  ;;  %v727_v13 = vsel %vm710_vm5, %v1769_v11, 0.0  ;;  %v1771_v17 = vpop.eup %1770 }
 0x2ef   : > { %1657 = vmatprep.mubr.msk.f32.mxu1 %vm1871_vm0, %v1872_v9  ;;  %v1773_v18 = vpop.eup %1772  ;;  %v913_v48 = vmul.f32 %v1771_v17, %v897_v47 }
 0x309   : > { %728 = vadd.xlane.f32.xlu1 %v727_v13 }
 0x31a   : > { %1000 = vperm.xlu1 %1764, %v1771_v17  }
 0x31e   : > { %1194 = vperm.xlu1 %1764, %v1773_v18  }
 0x350   : > { %v908_v19 = vpop.permute.xlu0 %907 }
 0x351   : > { %v910_v20 = vsub.f32 %v890_v46, %v908_v19 }
 0x353   : > { %v911_v21 = vmul.f32 1.442695, %v910_v20 }
 0x354   : > { %v1103_v22 = vpop.permute.xlu1 %1102  ;;  %v811_v42 = vpop.permute.xlu0 %810 }
 0x355   : > { %1774 = vpow2.f32 %v911_v21  ;;  %v1105_v23 = vsub.f32 %v1085_v49, %v1103_v22  ;;  %v813_v43 = vmul.f32 %v811_v42, %v807_v41 }
 0x357   : > { %v1106_v24 = vmul.f32 1.442695, %v1105_v23 }
 0x358   : > { %v922_v25 = vpop.permute.xlu1 %921 }
 0x359   : > { %1776 = vpow2.f32 %v1106_v24  ;;  %1656 = vmatpush3.msra.mxu1 %v922_v25 }
 0x35a   : > { %1665 = vmatprep.subr.mxu1 %v1872_v9 }
 0x35c   : > { %v1297_v26 = vpop.permute.xlu1 %1296 }
 0x35d   : > { %v1299_v27 = vsub.f32 %v2095_v52, %v1297_v26  ;;  %v1108_v52 = vmul.f32 %v1773_v18, %v1092_v50 }
 0x35f   : > { %v1775_v28 = vpop.eup %1774  ;;  %v1300_v29 = vmul.f32 1.442695, %v1299_v27 }
 0x360   : > { %v1116_v30 = vpop.permute.xlu1 %1115  ;;  %1658 = vmatmul.mubr.msk.f32.vlgmr.msra.gmra.mrb[6].mxu1 %vm710_vm5, %v1775_v28  ;;  %v914_v31 = vsel %vm710_vm5, %v1775_v28, 0.0 }
 0x361   : > { %1778 = vpow2.f32 %v1300_v29  ;;  %1666 = vmatpush3.msra.mxu1 %v1116_v30  ;;  %915 = vadd.xlane.f32.xlu0 %v914_v31 }
 0x362   : > { %1667 = vmatprep.mubr.msk.f32.mxu1 %vm1871_vm0, %v1872_v9  ;;  %1675 = vmatprep.subr.mxu1 %v1872_v9 }
 0x363   : > { %v1777_v32 = vpop.eup %1776 }
 0x364   : > { %v1310_v33 = vpop.permute.xlu1 %1309  ;;  %1668 = vmatmul.mubr.msk.f32.vlgmr.msra.gmra.mrb[8].mxu1 %vm710_vm5, %v1777_v32  ;;  %v1109_v34 = vsel %vm710_vm5, %v1777_v32, 0.0 }
 0x365   : > { %1676 = vmatpush3.msra.mxu1 %v1310_v33  ;;  %1110 = vadd.xlane.f32.xlu0 %v1109_v34 }
 0x366   : > { %1677 = vmatprep.mubr.msk.f32.mxu1 %vm1871_vm0, %v1872_v9  ;;  %v1292_v9 = vmul.f32 1.442695, %v1291_v6 }
 0x368   : > { %1780 = vpow2.f32 %v1292_v9 }
 0x36b   : > { %v1779_v35 = vpop.eup %1778 }
 0x36c   : > { %1678 = vmatmul.mubr.msk.f32.vlgmr.msra.gmra.mrb[10].mxu1 %vm710_vm5, %v1779_v35  ;;  %v1303_v36 = vsel %vm710_vm5, %v1779_v35, 0.0 }
 0x36d   : > { %1304 = vadd.xlane.f32.xlu0 %v1303_v36 }
 0x372   : > { %v1781_v55 = vpop.eup %1780 }
 0x373   : > { %v1302_v57 = vmul.f32 %v1781_v55, %v1286_v56 }
 0x396   : > { %v729_v39 = vpop.xlane.xlu1 %728 }
 0x397   : > { %v730_v40 = vadd.f32 %v729_v39, %v726_v38 }
 0x399   : > { %732 = vst.msk [vmem:[#allocation4] sm:$0xff] %vm453_vm4, %v730_v40 }
 0x39a   : > { %v1001_v12 = vpop.permute.xlu1 %1000 }
 0x39e   : > { %v1195_v16 = vpop.permute.xlu1 %1194 }
 0x3a0   : > { %v1402_v61 = vld [vmem:[#allocation4] sm:$0xff] }
 0x3c1   : > { %v803_v44 = vpop.f32.mrb[4].mxu1 }
 0x3c2   : > { %v814_v45 = vadd.f32 %v813_v43, %v803_v44  ;;  %v1649_v46 = vpop.f32.mrb[5].mxu1 }
 0x3c4   : > { %815 = vst.msk [vmem:[#allocation5] sm:$0xff] %vm631_vm3, %v814_v45 }
 0x3cb   : > { %v997_v11 = vld [vmem:[#allocation5] sm:$0xff] }
 0x3cc   : > { %v1003_v13 = vmul.f32 %v1001_v12, %v997_v11 }
 0x3ee   : > { %v916_v49 = vpop.xlane.xlu0 %915 }
 0x3ef   : > { %v917_v51 = vadd.f32 %v916_v49, %v913_v48 }
 0x3f1   : > { %918 = vst.msk [vmem:[#allocation4 + $0x8] sm:$0xff] %vm453_vm4, %v917_v51 }
 0x3f2   : > { %v1111_v53 = vpop.xlane.xlu0 %1110 }
 0x3f3   : > { %v1112_v54 = vadd.f32 %v1111_v53, %v1108_v52 }
 0x3f5   : > { %1113 = vst.msk [vmem:[#allocation4 + $0x10] sm:$0xff] %vm453_vm4, %v1112_v54 }
 0x3f8   : > { %v1412_v3 = vld [vmem:[#allocation4 + $0x8] sm:$0xff] }
 0x3fa   : > { %v1305_v58 = vpop.xlane.xlu0 %1304 }
 0x3fb   : > { %v1306_v59 = vadd.f32 %v1305_v58, %v1302_v57 }
 0x3fc   : > { %v1422_v60 = vld [vmem:[#allocation4 + $0x10] sm:$0xff] }
 0x3fd   : > { %1307 = vst.msk [vmem:[#allocation4 + $0x18] sm:$0xff] %vm453_vm4, %v1306_v59  ;;  %1782 = vrcp.f32 %v1422_v60 }
 0x3fe   : > { %1784 = vrcp.f32 %v1402_v61 }
 0x3ff   : > { %1786 = vrcp.f32 %v1412_v3 }
 0x404   : > { %v1432_v4 = vld [vmem:[#allocation4 + $0x18] sm:$0xff] }
 0x405   : > { %1788 = vrcp.f32 %v1432_v4 }
 0x407   : > { %v1783_v0 = vpop.eup %1782 }
 0x408   : > { %v1785_v5 = vpop.eup %1784 }
 0x409   : > { %v1787_v8 = vpop.eup %1786 }
 0x40f   : > { %v1789_v10 = vpop.eup %1788 }
 0x433   : > { %v993_v62 = vpop.f32.mrb[6].mxu1 }
 0x434   : > { %v1659_v63 = vpop.f32.mrb[7].mxu1  ;;  %1005 = vrot.lane.b32.xlu0 %v993_v62, %s1878_s24  ;;  %s1881_s24 = smov [#allocation6]  }
 0x437   : > { %v1187_v1 = vpop.f32.mrb[8].mxu1 }
 0x438   : > { %1199 = vrot.lane.b32.xlu1 %v1187_v1, %s1879_s25  ;;  %v1669_v2 = vpop.f32.mrb[9].mxu1  ;;  %1427 = vperm.xlu0 %1765, %v1783_v0   ;;  %s1794_s25 = sshll.u32 %s1881_s24, 4  ;;  %s1795_s25 = int_to_ptr.vmem [resolvable:$false] %s1794_s25 }
 0x439   : > { %p1797_p1 = scmp.lt.s32.totalorder %s2159_s19, %s1795_s25 }
 0x43c   : > { %1388 = vperm.xlu1 %1764, %v1781_v55  }
 0x43f   : > { %v1381_v6 = vpop.f32.mrb[10].mxu1 }
 0x440   : > { %1407 = vperm.xlu1 %1764, %v1785_v5   ;;  %v1679_v7 = vpop.f32.mrb[11].mxu1 }
 0x444   : > { %1393 = vrot.lane.b32.xlu1 %v1381_v6, %s1880_s26  ;;  %s1796_s26 = scalar_lea.vmem %s1795_s25, 256 }
 0x445   : > { %p1798_p2 = scmp.lt.s32.totalorder %s1796_s26, %s1790_s23 }
 0x447   : > { %p1799_p3 = por %p1798_p2, %p1797_p1 }
 0x448   : > { %1417 = vperm.xlu1 %1764, %v1787_v8  }
 0x449   : > { %p1800_p5 = pnand %p1799_p3, %p1793_p0 }
 0x44c   : > { %1437 = vperm.xlu1 %1764, %v1789_v10  }
 0x4a6   : > { %v1006_v14 = vpop.permute.xlu0 %1005 }
 0x4a7   : > { %v1008_v15 = vadd.f32 %v1006_v14, %v1003_v13 }
 0x4a9   : > { %1010 = vst.msk [vmem:[#allocation5] sm:$0xff] %vm1009_vm6, %v1008_v15 }
 0x4aa   : > { %v1200_v19 = vpop.permute.xlu1 %1199 }
 0x4b0   : > { %v1191_v17 = vld [vmem:[#allocation5] sm:$0xff] }
 0x4b1   : > { %v1197_v18 = vmul.f32 %v1195_v16, %v1191_v17 }
 0x4b3   : > { %v1202_v20 = vadd.f32 %v1200_v19, %v1197_v18 }
 0x4b5   : > { %1204 = vst.msk [vmem:[#allocation5] sm:$0xff] %vm1203_vm7, %v1202_v20 }
 0x4b7   : > { %v1428_v31 = vpop.permute.xlu0 %1427 }
 0x4bb   : > { %v1389_v21 = vpop.permute.xlu1 %1388 }
 0x4bc   : > { %v1385_v22 = vld [vmem:[#allocation5] sm:$0xff] }
 0x4bd   : > { %v1391_v24 = vmul.f32 %v1389_v21, %v1385_v22 }
 0x4bf   : > { %v1408_v23 = vpop.permute.xlu1 %1407 }
 0x4c3   : > { %v1394_v25 = vpop.permute.xlu1 %1393 }
 0x4c4   : > { %v1396_v26 = vadd.f32 %v1394_v25, %v1391_v24 }
 0x4c6   : > { %1398 = vst.msk [vmem:[#allocation5] sm:$0xff] %vm1397_vm8, %v1396_v26 }
 0x4c7   : > { %v1418_v27 = vpop.permute.xlu1 %1417 }
 0x4cb   : > { %v1438_v32 = vpop.permute.xlu1 %1437 }
 0x4cd   : > { %v1414_v28 = vld [vmem:[#allocation5] sm:$0xff] }
 0x4ce   : > { %v1420_v29 = vmul.f32 %v1418_v27, %v1414_v28  ;;  %v1410_v30 = vmul.f32 %v1414_v28, %v1408_v23  ;;  %v1430_v33 = vmul.f32 %v1428_v31, %v1414_v28  ;;  %v1440_v34 = vmul.f32 %v1438_v32, %v1414_v28 }
 0x4d0   : > { %1411 = vst.msk [vmem:[%s346_s16] sm:$0xff] %vm631_vm3, %v1410_v30 }
 0x4d1   : > { %1421 = vst.msk [vmem:[%s346_s16] sm:$0xff] %vm1009_vm6, %v1420_v29 }
 0x4d2   : > { %1431 = vst.msk [vmem:[%s346_s16] sm:$0xff] %vm1203_vm7, %v1430_v33 }
 0x4d3   : > { %1441 = vst.msk [vmem:[%s346_s16] sm:$0xff] %vm1397_vm8, %v1440_v34 }
 0x4d4   : > { %1803 = shalt.err (!%p1800_p5)
}
 0x4d5   : > { %s1804_s11 = scalar_lea.hbm %s2157_s22, 128  ;;  %s1808_s16 = scalar_lea.hbm %s2214_s8, 256 }
 0x4d6   : > { %p1805_p6 = scmp.ne.s32.totalorder %s2157_s22, %s1804_s11  ;;  %p1809_p10 = scmp.lt.u32.totalorder %s2157_s22, %s2214_s8 }
 0x4d7   : > { %p1810_p11 = scmp.lt.u32.totalorder %s1808_s16, %s1804_s11  ;;  %p1812_p13 = scmp.lt.u32.totalorder %s1804_s11, %s2157_s22 }
 0x4d8   : > { %p1806_p7 = pnand %p1805_p6, %p1967_p4 }
 0x4d9   : > { %p1811_p12 = por %p1810_p11, %p1809_p10 }
 0x4da   : > { %p1807_p9 = pneg %p1806_p7 }
 0x4db   : > { %p1813_p0 = por %p1812_p13, %p1811_p12 }
 0x4dd   : > { %p1814_p1 = pnand %p1813_p0, %p1807_p9 }
 0x4df   : > { %1817 = shalt.err (!%p1814_p1)
}
 0x4e0   : > { %1698 = dma.vmem_to_hbm [thread:$0]  (%p1967_p4), %s2159_s19, 128, %s2157_s22, %s1443_s30  }
 0x4e1 PF: > { %p1704_p2 = scmp.ge.s32.totalorder %s1868_s10, 2  ;;  %s1469_s23 = sand.u32 1, %s1848_s27  }
 0x4e2   : > { %s1470_s24 = scalar_lea.sflag [#allocation7], %s1469_s23 }
 0x4e3   : > { %p1701_p3 = pnand %p1704_p2, %p1974_p8 }
 0x4e5   : > { %1843 = dma.done.wait (!%p1701_p3), %s1470_s24, 128  }
 0x4e6   : > { %1845 = vsyncadd (!%p1701_p3), %s1470_s24, 4294967168  ;;  %s21_s10 = sadd.s32 1, %s1868_s10   ;;  %s2217_s27 = smov %s1852_s28 }
 0x4e7   : > { %p18_p5 = scmp.ge.s32.totalorder %s21_s10, 4   ;;  %s2218_s28 = smov %s1856_s29 }
 0x4e8   : > { %s2219_s29 = smov %s1980_s18  ;;  %s2220_s30 = smov %s1864_s9 }
 0x4e9   : > { %s2221_s9 = smov %s2223_s13  ;;  %20 = sbr.rel (!%p18_p5) target bundleno = 4 (0x4), region = 104 }
 0x4f0   :  { %1475 = vsyncpa [#allocation7], 1 }
 0x4f1   :  { %1477 = vsyncpa [#allocation7 + $0x1], 1 }

</bundles_post_ra>
